<compile_context>
chip_gen: v6e
topology: v6e:2x2x1
jax: 0.10.0
libtpu: 0.0.40
codegen_flags: <defaults>
</compile_context>

<pallas_src>
import math
from functools import partial

import jax
import jax.numpy as jnp
from jax.experimental import pallas as pl
from jax.experimental.pallas import tpu as pltpu


def create_dct(n, m, dtype=jnp.float32):
    """Orthonormal DCT-II matrix of shape (m, n)."""
    i = jnp.arange(n, dtype=jnp.float32)[None, :]
    k = jnp.arange(m, dtype=jnp.float32)[:, None]
    mat = jnp.cos(math.pi * (2.0 * i + 1.0) * k / (2.0 * n))
    scale = jnp.where(k == 0, jnp.sqrt(1.0 / n), jnp.sqrt(2.0 / n))
    return (mat * scale).astype(dtype)


def _dct_attention_kernel(dct_ref, dctT_ref, mask_ref, q_ref, kv_ref,
                          x_ref, attn_ref, xd_scratch, *, num_heads, head_dim):
    """One grid step = one batch element, all heads at once.

    dct_ref : (M, N)          resident DCT matrix
    dctT_ref: (N, M)          resident DCT^T
    mask_ref: (1, N)          per-batch sequence mask
    q_ref   : (N, H*D)        lane-dense Q slab
    kv_ref  : (N, 2*H*D)      lane-dense [K | V] slab
    x_ref   : (N, H*D)        output slab
    attn_ref: (M, H*M)        packed per-head attention
    xd_scratch: (M, H*D) f32  per-head (attn @ V_dct) accumulator
    """
    f32 = jnp.float32
    HD = num_heads * head_dim
    M = dct_ref.shape[0]
    inv_sqrt_d = 1.0 / math.sqrt(head_dim)          # (1/sqrt(sqrt(D)))^2 folded into energy

    dct = dct_ref[...]                               # (M, N)
    dct_m = dct * mask_ref[...]                      # mask folded into the DCT (K/V path)

    # Wide, lane-dense DCT projections (one matmul for Q, one fused matmul for K|V).
    qd = jnp.dot(dct, q_ref[...], preferred_element_type=f32)      # (M, H*D)
    kvd = jnp.dot(dct_m, kv_ref[...], preferred_element_type=f32)  # (M, 2*H*D)
    kd = kvd[:, :HD]
    vd = kvd[:, HD:]

    # Per-head energy / softmax / attn @ V_dct (tiny (M, D) tiles; H is small and unrolled).
    for h in range(num_heads):
        lo = h * head_dim
        hi = lo + head_dim
        qd_h = qd[:, lo:hi]                          # (M, D)
        kd_h = kd[:, lo:hi]                          # (M, D)
        vd_h = vd[:, lo:hi]                          # (M, D)

        e = jnp.dot(qd_h, kd_h.T, preferred_element_type=f32) * inv_sqrt_d   # (M, M)
        e = e - jnp.max(e, axis=-1, keepdims=True)
        p = jnp.exp(e)
        a = p * pl.reciprocal(jnp.sum(p, axis=-1, keepdims=True), approx=False)

        attn_ref[:, h * M:(h + 1) * M] = a.astype(attn_ref.dtype)
        xd_scratch[:, lo:hi] = jnp.dot(a, vd_h, preferred_element_type=f32)   # (M, D)

    # x = dct^T @ (attn @ V_dct): one wide lane-dense (N, M) @ (M, H*D) matmul.
    x_ref[...] = jnp.dot(dctT_ref[...].astype(f32), xd_scratch[...],
                         preferred_element_type=f32).astype(x_ref.dtype)


@partial(jax.jit, static_argnames=("head_dim",))
def dct_attention(Q, K, V, mask, dct, head_dim):
    B, H, N, D = Q.shape
    M = dct.shape[0]
    HD = H * D

    # Lane-dense slabs: (B, H, N, D) -> (B, N, H*D); K and V fused into one slab.
    q_slab = jnp.transpose(Q, (0, 2, 1, 3)).reshape(B, N, HD)
    k_slab = jnp.transpose(K, (0, 2, 1, 3)).reshape(B, N, HD)
    v_slab = jnp.transpose(V, (0, 2, 1, 3)).reshape(B, N, HD)
    kv_slab = jnp.concatenate([k_slab, v_slab], axis=-1)            # (B, N, 2*H*D)

    dct = dct.astype(Q.dtype)
    dct_T = dct.T                                                   # (N, M), precomputed
    mask = mask.astype(Q.dtype)                                     # (B, 1, N)

    sq = pl.Squeezed()
    kernel = partial(_dct_attention_kernel, num_heads=H, head_dim=D)

    x_slab, attn_packed = pl.pallas_call(
        kernel,
        out_shape=(
            jax.ShapeDtypeStruct((B, N, HD), Q.dtype),              # x slab
            jax.ShapeDtypeStruct((B, M, H * M), jnp.float32),       # packed attention
        ),
        grid_spec=pltpu.PrefetchScalarGridSpec(
            num_scalar_prefetch=0,
            grid=(B,),
            in_specs=[
                pl.BlockSpec((M, N), lambda b: (0, 0)),              # dct      (resident)
                pl.BlockSpec((N, M), lambda b: (0, 0)),              # dct^T    (resident)
                pl.BlockSpec((sq, 1, N), lambda b: (b, 0, 0)),       # mask
                pl.BlockSpec((sq, N, HD), lambda b: (b, 0, 0)),      # Q slab
                pl.BlockSpec((sq, N, 2 * HD), lambda b: (b, 0, 0)),  # [K|V] slab
            ],
            out_specs=(
                pl.BlockSpec((sq, N, HD), lambda b: (b, 0, 0)),      # x slab
                pl.BlockSpec((sq, M, H * M), lambda b: (b, 0, 0)),   # attention slab
            ),
            scratch_shapes=[pltpu.VMEM((M, HD), jnp.float32)],
        ),
        compiler_params=pltpu.CompilerParams(
            dimension_semantics=("parallel",)),
    )(dct, dct_T, mask, q_slab, kv_slab)

    # Unpack lane-dense slabs back to the module's output layout.
    x = jnp.transpose(x_slab.reshape(B, N, H, D), (0, 2, 1, 3))             # (B, H, N, D)
    attention = jnp.transpose(attn_packed.reshape(B, M, H, M), (0, 2, 1, 3))  # (B, H, M, M)
    return x, attention


def dct_attention_reference(Q, K, V, mask, dct, head_dim):
    """Pure-JAX reference mirroring the PyTorch forward (max_n branch) literally."""
    scale = 1.0 / math.sqrt(math.sqrt(head_dim))
    mask_r = jnp.transpose(mask[:, None, :, :], (0, 1, 3, 2))   # (B,1,N,1)
    Qs = Q * scale
    Ks = K * scale * mask_r
    Vs = V * mask_r
    Qd = jnp.einsum('mn,bhnd->bhmd', dct, Qs)
    Kd = jnp.einsum('mn,bhnd->bhmd', dct, Ks)
    Vd = jnp.einsum('mn,bhnd->bhmd', dct, Vs)
    energy = jnp.einsum('bhmd,bhkd->bhmk', Qd, Kd)
    attn = jax.nn.softmax(energy, axis=-1)
    x = jnp.einsum('mn,bhmk,bhkd->bhnd', dct, attn, Vd)         # (Q_dct^T @ attn) @ V_dct
    return x, attn


# TODO(synk): the `max_n is None` branch (runtime FFT-based dct/idct along dim=-2 plus
# ConstantPad1d) has no clean Pallas equivalent here; only the precomputed Q_dct path
# is implemented.

if __name__ == "__main__":
    # Small shapes consistent with the forward:
    B, H, N, D = 2, 4, 16, 32     # batch, heads, seq (= maxN), head_dim  (H*D = 128 lanes)
    M = 8                         # maxM (retained DCT coefficients)

    key = jax.random.PRNGKey(0)
    kq, kk, kv = jax.random.split(key, 3)
    Q = jax.random.normal(kq, (B, H, N, D), dtype=jnp.float32)
    K = jax.random.normal(kk, (B, H, N, D), dtype=jnp.float32)
    V = jax.random.normal(kv, (B, H, N, D), dtype=jnp.float32)

    # Deterministic binary mask (B, 1, N): second batch has its last 3 positions masked.
    mask = jnp.ones((B, 1, N), dtype=jnp.float32)
    mask = mask.at[1, 0, N - 3:].set(0.0)

    dct = create_dct(n=N, m=M)    # Q_dct, shape (M, N)

    x, attn = dct_attention(Q, K, V, mask, dct, head_dim=D)
    jax.block_until_ready((x, attn))

    x_ref, attn_ref = dct_attention_reference(Q, K, V, mask, dct, head_dim=D)
    assert x.shape == (B, H, N, D) and attn.shape == (B, H, M, M)
    # Tolerances allow for TPU matmul precision of the default-precision XLA reference vs
    # the MXU kernel, plus the exact algebraic refactoring (scale folded into energy,
    # mask folded into the DCT, reassociated recombination). Genuine layout/mask/scale
    # bugs produce errors orders of magnitude larger than these bounds.
    assert jnp.allclose(x, x_ref, atol=2e-2, rtol=2e-2), float(jnp.max(jnp.abs(x - x_ref)))
    assert jnp.allclose(attn, attn_ref, atol=5e-3, rtol=2e-2), float(jnp.max(jnp.abs(attn - attn_ref)))

    print("KERNEL_OK")
</pallas_src>

<mosaic_0001>
module attributes {stable_mosaic.version = 11 : i64} {
  func.func @_dct_attention_kernel(%arg0: i32, %arg1: memref<8x16xf32, #tpu.memory_space<vmem>>, %arg2: memref<16x8xf32, #tpu.memory_space<vmem>>, %arg3: memref<1x1x16xf32, #tpu.memory_space<vmem>>, %arg4: memref<1x16x128xf32, #tpu.memory_space<vmem>>, %arg5: memref<1x16x256xf32, #tpu.memory_space<vmem>>, %arg6: memref<1x16x128xf32, #tpu.memory_space<vmem>>, %arg7: memref<1x8x32xf32, #tpu.memory_space<vmem>>, %arg8: memref<8x128xf32, #tpu.memory_space<vmem>>) attributes {dimension_semantics = [#tpu.dimension_semantics<parallel>], iteration_bounds = array<i64: 2>, scalar_prefetch = 0 : i64, scratch_operands = 1 : i64, tpu.core_type = #tpu.core_type<tc>, window_params = [{pipeline_mode = #tpu.pipeline_mode<synchronous>, transform_indices = @transform_0, window_bounds = array<i64: 8, 16>}, {pipeline_mode = #tpu.pipeline_mode<synchronous>, transform_indices = @transform_1, window_bounds = array<i64: 16, 8>}, {transform_indices = @transform_2, window_bounds = array<i64: 1, 1, 16>}, {transform_indices = @transform_3, window_bounds = array<i64: 1, 16, 128>}, {transform_indices = @transform_4, window_bounds = array<i64: 1, 16, 256>}, {transform_indices = @transform_5, window_bounds = array<i64: 1, 16, 128>}, {transform_indices = @transform_6, window_bounds = array<i64: 1, 8, 32>}]} {
    %c0 = arith.constant 0 : index
    %c0_0 = arith.constant 0 : index
    %0 = vector.load %arg1[%c0, %c0_0] : memref<8x16xf32, #tpu.memory_space<vmem>>, vector<8x16xf32>
    %c0_1 = arith.constant 0 : index
    %c0_2 = arith.constant 0 : index
    %c0_3 = arith.constant 0 : index
    %1 = vector.load %arg3[%c0_1, %c0_2, %c0_3] : memref<1x1x16xf32, #tpu.memory_space<vmem>>, vector<1x1x16xf32>
    %2 = vector.shape_cast %1 : vector<1x1x16xf32> to vector<1x16xf32>
    %3 = vector.broadcast %2 : vector<1x16xf32> to vector<8x16xf32>
    %4 = arith.mulf %0, %3 : vector<8x16xf32>
    %c0_4 = arith.constant 0 : index
    %c0_5 = arith.constant 0 : index
    %c0_6 = arith.constant 0 : index
    %5 = vector.load %arg4[%c0_4, %c0_5, %c0_6] : memref<1x16x128xf32, #tpu.memory_space<vmem>>, vector<1x16x128xf32>
    %6 = vector.shape_cast %5 : vector<1x16x128xf32> to vector<16x128xf32>
    %cst = arith.constant dense<0.000000e+00> : vector<8x128xf32>
    %7 = tpu.matmul %0, %6, %cst {dimension_numbers = #tpu.dot_dimension_numbers<[1], [0], [0], [1], [0, 0, 1, 1], [], []>} : vector<8x16xf32>, vector<16x128xf32>, vector<8x128xf32> -> vector<8x128xf32>
    %c0_7 = arith.constant 0 : index
    %c0_8 = arith.constant 0 : index
    %c0_9 = arith.constant 0 : index
    %8 = vector.load %arg5[%c0_7, %c0_8, %c0_9] : memref<1x16x256xf32, #tpu.memory_space<vmem>>, vector<1x16x256xf32>
    %9 = vector.shape_cast %8 : vector<1x16x256xf32> to vector<16x256xf32>
    %cst_10 = arith.constant dense<0.000000e+00> : vector<8x256xf32>
    %10 = tpu.matmul %4, %9, %cst_10 {dimension_numbers = #tpu.dot_dimension_numbers<[1], [0], [0], [1], [0, 0, 1, 1], [], []>} : vector<8x16xf32>, vector<16x256xf32>, vector<8x256xf32> -> vector<8x256xf32>
    %11 = vector.extract_strided_slice %10 {offsets = [0, 0], sizes = [8, 128], strides = [1, 1]} : vector<8x256xf32> to vector<8x128xf32>
    %12 = vector.extract_strided_slice %10 {offsets = [0, 128], sizes = [8, 128], strides = [1, 1]} : vector<8x256xf32> to vector<8x128xf32>
    %13 = vector.extract_strided_slice %7 {offsets = [0, 0], sizes = [8, 32], strides = [1, 1]} : vector<8x128xf32> to vector<8x32xf32>
    %14 = vector.extract_strided_slice %11 {offsets = [0, 0], sizes = [8, 32], strides = [1, 1]} : vector<8x128xf32> to vector<8x32xf32>
    %15 = vector.extract_strided_slice %12 {offsets = [0, 0], sizes = [8, 32], strides = [1, 1]} : vector<8x128xf32> to vector<8x32xf32>
    %16 = tpu.transpose %14, [1, 0] : vector<8x32xf32> -> vector<32x8xf32>
    %cst_11 = arith.constant dense<0.000000e+00> : vector<8x8xf32>
    %17 = tpu.matmul %13, %16, %cst_11 {dimension_numbers = #tpu.dot_dimension_numbers<[1], [0], [0], [1], [0, 0, 1, 1], [], []>} : vector<8x32xf32>, vector<32x8xf32>, vector<8x8xf32> -> vector<8x8xf32>
    %cst_12 = arith.constant 0.176776692 : f32
    %18 = vector.broadcast %cst_12 : f32 to vector<8x8xf32>
    %19 = arith.mulf %17, %18 : vector<8x8xf32>
    %cst_13 = arith.constant dense<0xFF800000> : vector<8xf32>
    %20 = vector.multi_reduction <maximumf>, %19, %cst_13 [1] : vector<8x8xf32> to vector<8xf32>
    %21 = vector.shape_cast %20 : vector<8xf32> to vector<8x1xf32>
    %22 = vector.broadcast %21 : vector<8x1xf32> to vector<8x8xf32>
    %23 = arith.subf %19, %22 : vector<8x8xf32>
    %24 = math.exp %23 : vector<8x8xf32>
    %cst_14 = arith.constant dense<0.000000e+00> : vector<8xf32>
    %25 = vector.multi_reduction <add>, %24, %cst_14 [1] : vector<8x8xf32> to vector<8xf32>
    %26 = vector.shape_cast %25 : vector<8xf32> to vector<8x1xf32>
    %27 = tpu.reciprocal %26 : vector<8x1xf32> -> vector<8x1xf32>
    %28 = vector.broadcast %27 : vector<8x1xf32> to vector<8x8xf32>
    %29 = arith.mulf %24, %28 : vector<8x8xf32>
    %c0_15 = arith.constant 0 : index
    %c0_16 = arith.constant 0 : index
    %c0_17 = arith.constant 0 : index
    %30 = vector.load %arg7[%c0_15, %c0_16, %c0_17] : memref<1x8x32xf32, #tpu.memory_space<vmem>>, vector<1x8x8xf32>
    %31 = vector.shape_cast %30 : vector<1x8x8xf32> to vector<8x8xf32>
    %32 = vector.shape_cast %29 : vector<8x8xf32> to vector<1x8x8xf32>
    tpu.vector_store %arg7[%c0_15, %c0_16, %c0_17], %32 {strides = array<i32>} : memref<1x8x32xf32, #tpu.memory_space<vmem>>, vector<1x8x8xf32>,
    %cst_18 = arith.constant dense<0.000000e+00> : vector<8x32xf32>
    %33 = tpu.matmul %29, %15, %cst_18 {dimension_numbers = #tpu.dot_dimension_numbers<[1], [0], [0], [1], [0, 0, 1, 1], [], []>} : vector<8x8xf32>, vector<8x32xf32>, vector<8x32xf32> -> vector<8x32xf32>
    %c0_19 = arith.constant 0 : index
    %c0_20 = arith.constant 0 : index
    %34 = vector.load %arg8[%c0_19, %c0_20] : memref<8x128xf32, #tpu.memory_space<vmem>>, vector<8x32xf32>
    tpu.vector_store %arg8[%c0_19, %c0_20], %33 {strides = array<i32>} : memref<8x128xf32, #tpu.memory_space<vmem>>, vector<8x32xf32>,
    %35 = vector.extract_strided_slice %7 {offsets = [0, 32], sizes = [8, 32], strides = [1, 1]} : vector<8x128xf32> to vector<8x32xf32>
    %36 = vector.extract_strided_slice %11 {offsets = [0, 32], sizes = [8, 32], strides = [1, 1]} : vector<8x128xf32> to vector<8x32xf32>
    %37 = vector.extract_strided_slice %12 {offsets = [0, 32], sizes = [8, 32], strides = [1, 1]} : vector<8x128xf32> to vector<8x32xf32>
    %38 = tpu.transpose %36, [1, 0] : vector<8x32xf32> -> vector<32x8xf32>
    %cst_21 = arith.constant dense<0.000000e+00> : vector<8x8xf32>
    %39 = tpu.matmul %35, %38, %cst_21 {dimension_numbers = #tpu.dot_dimension_numbers<[1], [0], [0], [1], [0, 0, 1, 1], [], []>} : vector<8x32xf32>, vector<32x8xf32>, vector<8x8xf32> -> vector<8x8xf32>
    %cst_22 = arith.constant 0.176776692 : f32
    %40 = vector.broadcast %cst_22 : f32 to vector<8x8xf32>
    %41 = arith.mulf %39, %40 : vector<8x8xf32>
    %cst_23 = arith.constant dense<0xFF800000> : vector<8xf32>
    %42 = vector.multi_reduction <maximumf>, %41, %cst_23 [1] : vector<8x8xf32> to vector<8xf32>
    %43 = vector.shape_cast %42 : vector<8xf32> to vector<8x1xf32>
    %44 = vector.broadcast %43 : vector<8x1xf32> to vector<8x8xf32>
    %45 = arith.subf %41, %44 : vector<8x8xf32>
    %46 = math.exp %45 : vector<8x8xf32>
    %cst_24 = arith.constant dense<0.000000e+00> : vector<8xf32>
    %47 = vector.multi_reduction <add>, %46, %cst_24 [1] : vector<8x8xf32> to vector<8xf32>
    %48 = vector.shape_cast %47 : vector<8xf32> to vector<8x1xf32>
    %49 = tpu.reciprocal %48 : vector<8x1xf32> -> vector<8x1xf32>
    %50 = vector.broadcast %49 : vector<8x1xf32> to vector<8x8xf32>
    %51 = arith.mulf %46, %50 : vector<8x8xf32>
    %c0_25 = arith.constant 0 : index
    %c0_26 = arith.constant 0 : index
    %c8 = arith.constant 8 : index
    %52 = vector.load %arg7[%c0_25, %c0_26, %c8] : memref<1x8x32xf32, #tpu.memory_space<vmem>>, vector<1x8x8xf32>
    %53 = vector.shape_cast %52 : vector<1x8x8xf32> to vector<8x8xf32>
    %54 = vector.shape_cast %51 : vector<8x8xf32> to vector<1x8x8xf32>
    tpu.vector_store %arg7[%c0_25, %c0_26, %c8], %54 {strides = array<i32>} : memref<1x8x32xf32, #tpu.memory_space<vmem>>, vector<1x8x8xf32>,
    %cst_27 = arith.constant dense<0.000000e+00> : vector<8x32xf32>
    %55 = tpu.matmul %51, %37, %cst_27 {dimension_numbers = #tpu.dot_dimension_numbers<[1], [0], [0], [1], [0, 0, 1, 1], [], []>} : vector<8x8xf32>, vector<8x32xf32>, vector<8x32xf32> -> vector<8x32xf32>
    %c0_28 = arith.constant 0 : index
    %c32 = arith.constant 32 : index
    %56 = vector.load %arg8[%c0_28, %c32] : memref<8x128xf32, #tpu.memory_space<vmem>>, vector<8x32xf32>
    tpu.vector_store %arg8[%c0_28, %c32], %55 {strides = array<i32>} : memref<8x128xf32, #tpu.memory_space<vmem>>, vector<8x32xf32>,
    %57 = vector.extract_strided_slice %7 {offsets = [0, 64], sizes = [8, 32], strides = [1, 1]} : vector<8x128xf32> to vector<8x32xf32>
    %58 = vector.extract_strided_slice %11 {offsets = [0, 64], sizes = [8, 32], strides = [1, 1]} : vector<8x128xf32> to vector<8x32xf32>
    %59 = vector.extract_strided_slice %12 {offsets = [0, 64], sizes = [8, 32], strides = [1, 1]} : vector<8x128xf32> to vector<8x32xf32>
    %60 = tpu.transpose %58, [1, 0] : vector<8x32xf32> -> vector<32x8xf32>
    %cst_29 = arith.constant dense<0.000000e+00> : vector<8x8xf32>
    %61 = tpu.matmul %57, %60, %cst_29 {dimension_numbers = #tpu.dot_dimension_numbers<[1], [0], [0], [1], [0, 0, 1, 1], [], []>} : vector<8x32xf32>, vector<32x8xf32>, vector<8x8xf32> -> vector<8x8xf32>
    %cst_30 = arith.constant 0.176776692 : f32
    %62 = vector.broadcast %cst_30 : f32 to vector<8x8xf32>
    %63 = arith.mulf %61, %62 : vector<8x8xf32>
    %cst_31 = arith.constant dense<0xFF800000> : vector<8xf32>
    %64 = vector.multi_reduction <maximumf>, %63, %cst_31 [1] : vector<8x8xf32> to vector<8xf32>
    %65 = vector.shape_cast %64 : vector<8xf32> to vector<8x1xf32>
    %66 = vector.broadcast %65 : vector<8x1xf32> to vector<8x8xf32>
    %67 = arith.subf %63, %66 : vector<8x8xf32>
    %68 = math.exp %67 : vector<8x8xf32>
    %cst_32 = arith.constant dense<0.000000e+00> : vector<8xf32>
    %69 = vector.multi_reduction <add>, %68, %cst_32 [1] : vector<8x8xf32> to vector<8xf32>
    %70 = vector.shape_cast %69 : vector<8xf32> to vector<8x1xf32>
    %71 = tpu.reciprocal %70 : vector<8x1xf32> -> vector<8x1xf32>
    %72 = vector.broadcast %71 : vector<8x1xf32> to vector<8x8xf32>
    %73 = arith.mulf %68, %72 : vector<8x8xf32>
    %c0_33 = arith.constant 0 : index
    %c0_34 = arith.constant 0 : index
    %c16 = arith.constant 16 : index
    %74 = vector.load %arg7[%c0_33, %c0_34, %c16] : memref<1x8x32xf32, #tpu.memory_space<vmem>>, vector<1x8x8xf32>
    %75 = vector.shape_cast %74 : vector<1x8x8xf32> to vector<8x8xf32>
    %76 = vector.shape_cast %73 : vector<8x8xf32> to vector<1x8x8xf32>
    tpu.vector_store %arg7[%c0_33, %c0_34, %c16], %76 {strides = array<i32>} : memref<1x8x32xf32, #tpu.memory_space<vmem>>, vector<1x8x8xf32>,
    %cst_35 = arith.constant dense<0.000000e+00> : vector<8x32xf32>
    %77 = tpu.matmul %73, %59, %cst_35 {dimension_numbers = #tpu.dot_dimension_numbers<[1], [0], [0], [1], [0, 0, 1, 1], [], []>} : vector<8x8xf32>, vector<8x32xf32>, vector<8x32xf32> -> vector<8x32xf32>
    %c0_36 = arith.constant 0 : index
    %c64 = arith.constant 64 : index
    %78 = vector.load %arg8[%c0_36, %c64] : memref<8x128xf32, #tpu.memory_space<vmem>>, vector<8x32xf32>
    tpu.vector_store %arg8[%c0_36, %c64], %77 {strides = array<i32>} : memref<8x128xf32, #tpu.memory_space<vmem>>, vector<8x32xf32>,
    %79 = vector.extract_strided_slice %7 {offsets = [0, 96], sizes = [8, 32], strides = [1, 1]} : vector<8x128xf32> to vector<8x32xf32>
    %80 = vector.extract_strided_slice %11 {offsets = [0, 96], sizes = [8, 32], strides = [1, 1]} : vector<8x128xf32> to vector<8x32xf32>
    %81 = vector.extract_strided_slice %12 {offsets = [0, 96], sizes = [8, 32], strides = [1, 1]} : vector<8x128xf32> to vector<8x32xf32>
    %82 = tpu.transpose %80, [1, 0] : vector<8x32xf32> -> vector<32x8xf32>
    %cst_37 = arith.constant dense<0.000000e+00> : vector<8x8xf32>
    %83 = tpu.matmul %79, %82, %cst_37 {dimension_numbers = #tpu.dot_dimension_numbers<[1], [0], [0], [1], [0, 0, 1, 1], [], []>} : vector<8x32xf32>, vector<32x8xf32>, vector<8x8xf32> -> vector<8x8xf32>
    %cst_38 = arith.constant 0.176776692 : f32
    %84 = vector.broadcast %cst_38 : f32 to vector<8x8xf32>
    %85 = arith.mulf %83, %84 : vector<8x8xf32>
    %cst_39 = arith.constant dense<0xFF800000> : vector<8xf32>
    %86 = vector.multi_reduction <maximumf>, %85, %cst_39 [1] : vector<8x8xf32> to vector<8xf32>
    %87 = vector.shape_cast %86 : vector<8xf32> to vector<8x1xf32>
    %88 = vector.broadcast %87 : vector<8x1xf32> to vector<8x8xf32>
    %89 = arith.subf %85, %88 : vector<8x8xf32>
    %90 = math.exp %89 : vector<8x8xf32>
    %cst_40 = arith.constant dense<0.000000e+00> : vector<8xf32>
    %91 = vector.multi_reduction <add>, %90, %cst_40 [1] : vector<8x8xf32> to vector<8xf32>
    %92 = vector.shape_cast %91 : vector<8xf32> to vector<8x1xf32>
    %93 = tpu.reciprocal %92 : vector<8x1xf32> -> vector<8x1xf32>
    %94 = vector.broadcast %93 : vector<8x1xf32> to vector<8x8xf32>
    %95 = arith.mulf %90, %94 : vector<8x8xf32>
    %c0_41 = arith.constant 0 : index
    %c0_42 = arith.constant 0 : index
    %c24 = arith.constant 24 : index
    %96 = vector.load %arg7[%c0_41, %c0_42, %c24] : memref<1x8x32xf32, #tpu.memory_space<vmem>>, vector<1x8x8xf32>
    %97 = vector.shape_cast %96 : vector<1x8x8xf32> to vector<8x8xf32>
    %98 = vector.shape_cast %95 : vector<8x8xf32> to vector<1x8x8xf32>
    tpu.vector_store %arg7[%c0_41, %c0_42, %c24], %98 {strides = array<i32>} : memref<1x8x32xf32, #tpu.memory_space<vmem>>, vector<1x8x8xf32>,
    %cst_43 = arith.constant dense<0.000000e+00> : vector<8x32xf32>
    %99 = tpu.matmul %95, %81, %cst_43 {dimension_numbers = #tpu.dot_dimension_numbers<[1], [0], [0], [1], [0, 0, 1, 1], [], []>} : vector<8x8xf32>, vector<8x32xf32>, vector<8x32xf32> -> vector<8x32xf32>
    %c0_44 = arith.constant 0 : index
    %c96 = arith.constant 96 : index
    %100 = vector.load %arg8[%c0_44, %c96] : memref<8x128xf32, #tpu.memory_space<vmem>>, vector<8x32xf32>
    tpu.vector_store %arg8[%c0_44, %c96], %99 {strides = array<i32>} : memref<8x128xf32, #tpu.memory_space<vmem>>, vector<8x32xf32>,
    %c0_45 = arith.constant 0 : index
    %c0_46 = arith.constant 0 : index
    %101 = vector.load %arg2[%c0_45, %c0_46] : memref<16x8xf32, #tpu.memory_space<vmem>>, vector<16x8xf32>
    %c0_47 = arith.constant 0 : index
    %c0_48 = arith.constant 0 : index
    %102 = vector.load %arg8[%c0_47, %c0_48] : memref<8x128xf32, #tpu.memory_space<vmem>>, vector<8x128xf32>
    %cst_49 = arith.constant dense<0.000000e+00> : vector<16x128xf32>
    %103 = tpu.matmul %101, %102, %cst_49 {dimension_numbers = #tpu.dot_dimension_numbers<[1], [0], [0], [1], [0, 0, 1, 1], [], []>} : vector<16x8xf32>, vector<8x128xf32>, vector<16x128xf32> -> vector<16x128xf32>
    %c0_50 = arith.constant 0 : index
    %c0_51 = arith.constant 0 : index
    %c0_52 = arith.constant 0 : index
    %104 = vector.load %arg6[%c0_50, %c0_51, %c0_52] : memref<1x16x128xf32, #tpu.memory_space<vmem>>, vector<1x16x128xf32>
    %105 = vector.shape_cast %104 : vector<1x16x128xf32> to vector<16x128xf32>
    %106 = vector.shape_cast %103 : vector<16x128xf32> to vector<1x16x128xf32>
    tpu.vector_store %arg6[%c0_50, %c0_51, %c0_52], %106 {strides = array<i32>} : memref<1x16x128xf32, #tpu.memory_space<vmem>>, vector<1x16x128xf32>,
    return
  }
  func.func @transform_0(%arg0: i32) -> (i32, i32) {
    %c0_i32 = arith.constant 0 : i32
    %c0_i32_0 = arith.constant 0 : i32
    %c0_i32_1 = arith.constant 0 : i32
    return %c0_i32, %c0_i32_0 : i32, i32
  }
  func.func @transform_1(%arg0: i32) -> (i32, i32) {
    %c0_i32 = arith.constant 0 : i32
    %c0_i32_0 = arith.constant 0 : i32
    %c0_i32_1 = arith.constant 0 : i32
    return %c0_i32, %c0_i32_0 : i32, i32
  }
  func.func @transform_2(%arg0: i32) -> (i32, i32, i32) {
    %c0_i32 = arith.constant 0 : i32
    %c0_i32_0 = arith.constant 0 : i32
    %c0_i32_1 = arith.constant 0 : i32
    return %arg0, %c0_i32, %c0_i32_0 : i32, i32, i32
  }
  func.func @transform_3(%arg0: i32) -> (i32, i32, i32) {
    %c0_i32 = arith.constant 0 : i32
    %c0_i32_0 = arith.constant 0 : i32
    %c0_i32_1 = arith.constant 0 : i32
    return %arg0, %c0_i32, %c0_i32_0 : i32, i32, i32
  }
  func.func @transform_4(%arg0: i32) -> (i32, i32, i32) {
    %c0_i32 = arith.constant 0 : i32
    %c0_i32_0 = arith.constant 0 : i32
    %c0_i32_1 = arith.constant 0 : i32
    return %arg0, %c0_i32, %c0_i32_0 : i32, i32, i32
  }
  func.func @transform_5(%arg0: i32) -> (i32, i32, i32) {
    %c0_i32 = arith.constant 0 : i32
    %c0_i32_0 = arith.constant 0 : i32
    %c0_i32_1 = arith.constant 0 : i32
    return %arg0, %c0_i32, %c0_i32_0 : i32, i32, i32
  }
  func.func @transform_6(%arg0: i32) -> (i32, i32, i32) {
    %c0_i32 = arith.constant 0 : i32
    %c0_i32_0 = arith.constant 0 : i32
    %c0_i32_1 = arith.constant 0 : i32
    return %arg0, %c0_i32, %c0_i32_0 : i32, i32, i32
  }
}

</mosaic_0001>

<bundles_post_ra>
// kernel: dct_attention.1
= control target key start
LH: loop header
LB: loop body
LE: loop exit
PB: predicated region body
PF: predicated region fallthrough
CT: control target
= control target key end

     0   :  { %s1541_s21 = smov 0   ;;  %s1663_s0 = inlined_call_operand.vmem [shape: f32[8,16], index: 0, kind: input, shape index: {}]   ;;  %s1664_s1 = inlined_call_operand.vmem [shape: f32[16,8], index: 1, kind: input, shape index: {}]   ;;  %s1665_s2 = inlined_call_operand.vmem [shape: f32[2,1,16], index: 2, kind: input, shape index: {}]   ;;  %s1666_s3 = inlined_call_operand.vmem [shape: f32[2,16,128], index: 3, kind: input, shape index: {}]   ;;  %s1667_s4 = inlined_call_operand.vmem [shape: f32[2,16,256], index: 4, kind: input, shape index: {}]   ;;  %s1668_s5 = inlined_call_operand.vmem [shape: f32[2,16,128], index: 5, kind: output, shape index: {0}]   ;;  %s1669_s6 = inlined_call_operand.vmem [shape: f32[2,8,32], index: 6, kind: output, shape index: {1}]  }
   0x1 LB: > { %s1350_s22 = sadd.s32 4294967295, %s1496_s21   ;;  %p1354_p0 = scmp.ge.s32.totalorder %s1496_s21, 1  ;;  %s1496_s21 = sphi %s1541_s21, %s17_s21  }
   0x2   : > { %p233_p1 = scmp.lt.s32.totalorder %s1496_s21, 3 }
   0x4   : > { %p234_p2 = pnand %p1354_p0, %p233_p1 }
   0x5   : > { %p275_p3 = scmp.lt.s32.totalorder (!%p234_p2), %s1350_s22, 1  ;;  %s1500_s12 = smov (!%p234_p2), 64  }
   0x6   : > { %237 = sbr.rel (%p234_p2) target bundleno = 1362 (0x552), region = 40  ;;  %s1501_s13 = smov (!%p234_p2), 96  }
   0x7   : > { %s1502_s14 = smov (!%p234_p2), 32   ;;  %s1504_s25 = smov (!%p234_p2), 24  }
   0x8   : > { %s1505_s26 = smov (!%p234_p2), 16  }
   0xb   : > { %v1498_v0 = vmov 0.0   ;;  %s1671_s22 = smov (!%p275_p3, %s1350_s22), 1  ;;  %vm1499_vm0 = vmmov 0   ;;  %v297_v1 = vld [vmem:[%s1663_s0] sm:$0xff]  ;;  %vm308_vm1 = vcmask 130048   ;;  %vm460_vm2 = vcmask 261120  }
   0xc   : > { %1406 = vmatprep.subr.mxu0 %v1498_v0  ;;  %453 = vmatprep.mubr.f32.mxu1 %v1498_v0  ;;  %s1382_s23 = sshll.u32 %s1671_s22, 5  ;;  %s1381_s24 = sshll.u32 %s1671_s22, 4  ;;  %vm538_vm3 = vcmask 64512   ;;  %vm801_vm4 = vcmask 523520   ;;  %vm978_vm5 = vcmask 785920   ;;  %vm719_vm6 = vcmask 130112  }
   0xd   : > { %1410 = vmatprep.mubr.msk.f32.mxu0 %vm1499_vm0, %v1498_v0  ;;  %s287_s27 = scalar_lea.vmem %s1667_s4, %s1382_s23  ;;  %s282_s30 = scalar_lea.vmem %s1666_s3, %s1381_s24  ;;  %vm1155_vm7 = vcmask 1048320   ;;  %vm897_vm8 = vcmask 195712   ;;  %vm1074_vm9 = vcmask 261312  }
   0xe   : > { %v385_v2 = vld [vmem:[%s287_s27 + $0x18] sm:$0xff]  ;;  %v384_v3 = vld [vmem:[%s287_s27 + $0x10] sm:$0xff]  ;;  %v383_v4 = vld [vmem:[%s287_s27 + $0x8] sm:$0xff]  ;;  %s277_s11 = scalar_lea.vmem %s1665_s2, %s1671_s22  ;;  %s1361_s15 = sshll.u32 %s1671_s22, 3 }
   0xf   : > { %417 = vmatprep.subr.mxu1 %v385_v2  ;;  %v307_v5 = vld [vmem:[%s282_s30 + $0x8] sm:$0xff]  ;;  %v382_v6 = vld [vmem:[%s287_s27] sm:$0xff]  ;;  %s1624_s18 = scalar_lea.vmem %s1669_s6, %s1361_s15  ;;  %s1503_s23 = smov 8  }
  0x10   : > { %v1362_v7 = vld [vmem:[%s277_s11] ss:$0 sm:$0xff]  ;;  %418 = vmatpush1.msra.mxu1 %v384_v3  ;;  %1407 = vmatpush3.msra.mxu0 %v307_v5  ;;  %s292_s7 = scalar_lea.vmem %s1668_s5, %s1381_s24 }
  0x11   : > { %v305_v8 = vmul.f32 %v1362_v7, %v297_v1  ;;  %v306_v9 = vld [vmem:[%s282_s30] sm:$0xff]  ;;  %419 = vmatprep.subr.mxu1 %v383_v4  ;;  %1408 = vmatprep.subr.mxu0 %v1498_v0 }
  0x12   : > { %420 = vmatpush1.msra.mxu1 %v382_v6  ;;  %1409 = vmatpush3.msra.mxu0 %v306_v9 }
  0x13   : > { %1364 = vmatmul.mubr.msk.f32.vlgmr.msra.gmra.mxu1 %vm308_vm1, %v305_v8  ;;  %1411 = vmatmul.mubr.msk.f32.vlgmr.msra.gmra.mxu0 %vm308_vm1, %v297_v1 }
  0x14   : > { %1413 = vmatprep.subr.mxu0 %v1498_v0  ;;  %1418 = vmatprep.subr.mxu1 %v1498_v0 }
  0x15   : > { %1415 = vmatprep.mubr.msk.f32.mxu0 %vm1499_vm0, %v1498_v0  ;;  %1420 = vmatprep.mubr.msk.f32.mxu1 %vm1499_vm0, %v1498_v0 }
  0xd3   : > { %v455_v10 = vpop.f32.mrf.mxu1  ;;  %v378_v11 = vpop.f32.mrf.mxu0 }
  0xd4   : > { %805 = vrot.lane.b32.xlu1 %v455_v10, %s1500_s12  ;;  %627 = vrot.lane.b32.xlu0 %v455_v10, %s1501_s13 }
  0xd5   : > { %1414 = vmatpush3.xpose.msk.msra.mxu0 %vm460_vm2, %v455_v10  ;;  %v1582_v12 = vpop.f32.mrf.mxu1  ;;  %v1412_v13 = vpop.f32.mrf.mxu0 }
  0xd6   : > { %1419 = vmatpush3.msra.mxu1 %v1582_v12  ;;  %1423 = vmatprep.subr.mxu0 %v1498_v0  ;;  %v1157_v13 = vld [vmem:[%s1664_s1] sm:$0xff] }
  0xd7   : > { %1428 = vmatprep.subr.mxu1 %v1498_v0 }
  0xd8   : > { %1416 = vmatmul.mubr.msk.f32.vlgmr.msra.gmra.mxu0 %vm460_vm2, %v378_v11  ;;  %803 = vrot.lane.b32.xlu1 %v378_v11, %s1500_s12 }
  0xd9   : > { %625 = vrot.lane.b32.xlu0 %v378_v11, %s1501_s13  ;;  %1425 = vmatprep.mubr.msk.f32.mxu0 %vm1499_vm0, %v1498_v0 }
  0xdc   : > { %980 = vrot.lane.b32.xlu1 %v378_v11, %s1502_s14 }
  0xdd   : > { %982 = vrot.lane.b32.xlu0 %v455_v10, %s1502_s14 }
 0x146   : > { %v628_v14 = vpop.permute.xlu0 %627  ;;  %v806_v15 = vpop.permute.xlu1 %805 }
 0x147   : > { %1424 = vmatpush3.xpose.msk.msra.mxu0 %vm460_vm2, %v628_v14 }
 0x148   : > { %1433 = vmatprep.subr.mxu0 %v1498_v0 }
 0x14a   : > { %v804_v17 = vpop.permute.xlu1 %803 }
 0x14b   : > { %v626_v16 = vpop.permute.xlu0 %625 }
 0x14c   : > { %1426 = vmatmul.mubr.msk.f32.vlgmr.msra.gmra.mxu0 %vm460_vm2, %v626_v16 }
 0x14d   : > { %1434 = vmatpush3.xpose.msk.msra.mxu0 %vm460_vm2, %v806_v15  ;;  %1435 = vmatprep.mubr.msk.f32.mxu0 %vm1499_vm0, %v1498_v0 }
 0x14e   : > { %1443 = vmatprep.subr.mxu0 %v1498_v0  ;;  %v981_v19 = vpop.permute.xlu1 %980 }
 0x14f   : > { %v983_v18 = vpop.permute.xlu0 %982 }
 0x150   : > { %1436 = vmatmul.mubr.msk.f32.vlgmr.msra.gmra.mxu0 %vm460_vm2, %v804_v17 }
 0x151   : > { %1444 = vmatpush3.xpose.msk.msra.mxu0 %vm460_vm2, %v983_v18  ;;  %1445 = vmatprep.mubr.msk.f32.mxu0 %vm1499_vm0, %v1498_v0 }
 0x154   : > { %1446 = vmatmul.mubr.msk.f32.vlgmr.msra.gmra.mxu0 %vm460_vm2, %v981_v19 }
 0x155   : > { %1455 = vmatprep.mubr.msk.f32.mxu0 %vm538_vm3, %v1157_v13 }
 0x198   : > { %v533_v20 = vpop.f32.mrf.mxu0 }
 0x199   : > { %v537_v21 = vmul.f32 0.17677669, %v533_v20 }
 0x19a   : > { %v1417_v22 = vpop.f32.mrf.mxu0 }
 0x19b   : > { %v539_v23 = vsel %vm538_vm3, %v537_v21, -inf }
 0x19c   : > { %540 = vmax.xlane.f32.xlu0 %v539_v23  ;;  %v1158_v23 = vld [vmem:[%s1664_s1 + $0x8] sm:$0xff] }
 0x20c   : > { %v699_v24 = vpop.f32.mrf.mxu0 }
 0x20d   : > { %v703_v25 = vmul.f32 0.17677669, %v699_v24 }
 0x20e   : > { %v1427_v26 = vpop.f32.mrf.mxu0 }
 0x20f   : > { %v704_v27 = vsel %vm538_vm3, %v703_v25, -inf }
 0x210   : > { %705 = vmax.xlane.f32.xlu1 %v704_v27  ;;  %v877_v28 = vpop.f32.mrf.mxu0 }
 0x211   : > { %v881_v29 = vmul.f32 0.17677669, %v877_v28 }
 0x212   : > { %v1437_v30 = vpop.f32.mrf.mxu0 }
 0x213   : > { %v882_v31 = vsel %vm538_vm3, %v881_v29, -inf }
 0x214   : > { %883 = vmax.xlane.f32.xlu0 %v882_v31  ;;  %v1054_v32 = vpop.f32.mrf.mxu0 }
 0x215   : > { %v1058_v33 = vmul.f32 0.17677669, %v1054_v32 }
 0x216   : > { %v1447_v34 = vpop.f32.mrf.mxu0 }
 0x217   : > { %v1059_v35 = vsel %vm538_vm3, %v1058_v33, -inf }
 0x218   : > { %1060 = vmax.xlane.f32.xlu0 %v1059_v35 }
 0x221   : > { %722 = vrot.lane.b32.xlu1 %v1582_v12, %s1501_s13 }
 0x225   : > { %v541_v36 = vpop.xlane.xlu0 %540 }
 0x226   : > { %v542_v37 = vsub.f32 %v537_v21, %v541_v36 }
 0x228   : > { %v543_v38 = vmul.f32 1.442695, %v542_v37 }
 0x22a   : > { %1474 = vpow2.f32 %v543_v38 }
 0x237   : > { %v1475_v39 = vpop.eup %1474 }
 0x238   : > { %v545_v40 = vsel %vm538_vm3, %v1475_v39, 0.0 }
 0x245   : > { %546 = vadd.xlane.f32.xlu1 %v545_v40 }
 0x299   : > { %v706_v41 = vpop.xlane.xlu1 %705 }
 0x29a   : > { %v707_v42 = vsub.f32 %v703_v25, %v706_v41 }
 0x29c   : > { %v708_v43 = vmul.f32 1.442695, %v707_v42 }
 0x29d   : > { %v884_v44 = vpop.xlane.xlu0 %883  ;;  %v723_v56 = vpop.permute.xlu1 %722 }
 0x29e   : > { %1476 = vpow2.f32 %v708_v43  ;;  %v885_v45 = vsub.f32 %v881_v29, %v884_v44 }
 0x2a0   : > { %v886_v46 = vmul.f32 1.442695, %v885_v45 }
 0x2a1   : > { %v1061_v47 = vpop.xlane.xlu0 %1060 }
 0x2a2   : > { %1478 = vpow2.f32 %v886_v46  ;;  %v1062_v48 = vsub.f32 %v1058_v33, %v1061_v47 }
 0x2a4   : > { %v1063_v49 = vmul.f32 1.442695, %v1062_v48 }
 0x2a6   : > { %1480 = vpow2.f32 %v1063_v49 }
 0x2ab   : > { %v1477_v50 = vpop.eup %1476 }
 0x2ac   : > { %v710_v51 = vsel %vm538_vm3, %v1477_v50, 0.0 }
 0x2ad   : > { %711 = vadd.xlane.f32.xlu0 %v710_v51 }
 0x2af   : > { %v1479_v52 = vpop.eup %1478 }
 0x2b0   : > { %v888_v53 = vsel %vm538_vm3, %v1479_v52, 0.0 }
 0x2b1   : > { %889 = vadd.xlane.f32.xlu1 %v888_v53 }
 0x2b3   : > { %v1481_v54 = vpop.eup %1480 }
 0x2b4   : > { %v1065_v55 = vsel %vm538_vm3, %v1481_v54, 0.0 }
 0x2b5   : > { %1066 = vadd.xlane.f32.xlu0 %v1065_v55 }
 0x2c2   : > { %1076 = vrot.lane.b32.xlu1 %v1582_v12, %s1502_s14 }
 0x2cb   : > { %899 = vrot.lane.b32.xlu0 %v1582_v12, %s1500_s12 }
 0x2ce   : > { %v547_v57 = vpop.xlane.xlu1 %546 }
 0x2cf   : > { %1482 = vrcp.f32 %v547_v57 }
 0x2dc   : > { %v1483_v58 = vpop.eup %1482 }
 0x2dd   : > { %v549_v59 = vmul.f32 %v1483_v58, %v1475_v39 }
 0x2df   : > { %1421 = vmatmul.mubr.msk.f32.vlgmr.msra.gmra.mxu1 %vm538_vm3, %v549_v59  ;;  %550 = vst.msk [vmem:[%s1624_s18] sm:$0xff] %vm538_vm3, %v549_v59 }
 0x2e0   : > { %1429 = vmatpush3.msra.mxu1 %v723_v56  ;;  %1430 = vmatprep.mubr.msk.f32.mxu1 %vm1499_vm0, %v1498_v0 }
 0x2e1   : > { %1438 = vmatprep.subr.mxu1 %v1498_v0 }
 0x336   : > { %v712_v60 = vpop.xlane.xlu0 %711 }
 0x337   : > { %1484 = vrcp.f32 %v712_v60 }
 0x33a   : > { %v890_v61 = vpop.xlane.xlu1 %889 }
 0x33b   : > { %1486 = vrcp.f32 %v890_v61 }
 0x33e   : > { %v1067_v62 = vpop.xlane.xlu0 %1066  ;;  %v1077_v5 = vpop.permute.xlu1 %1076 }
 0x33f   : > { %1488 = vrcp.f32 %v1067_v62 }
 0x342   : > { %v900_v2 = vpop.permute.xlu0 %899 }
 0x344   : > { %v1485_v63 = vpop.eup %1484 }
 0x345   : > { %v714_v1 = vmul.f32 %v1485_v63, %v1477_v50 }
 0x347   : > { %1431 = vmatmul.mubr.msk.f32.vlgmr.msra.gmra.mxu1 %vm538_vm3, %v714_v1 }
 0x348   : > { %v1487_v3 = vpop.eup %1486  ;;  %1439 = vmatpush3.msra.mxu1 %v900_v2  ;;  %1440 = vmatprep.mubr.msk.f32.mxu1 %vm1499_vm0, %v1498_v0 }
 0x349   : > { %1448 = vmatprep.subr.mxu1 %v1498_v0  ;;  %v892_v4 = vmul.f32 %v1487_v3, %v1479_v52 }
 0x34b   : > { %1441 = vmatmul.mubr.msk.f32.vlgmr.msra.gmra.mxu1 %vm538_vm3, %v892_v4 }
 0x34c   : > { %v1489_v6 = vpop.eup %1488  ;;  %1449 = vmatpush3.msra.mxu1 %v1077_v5  ;;  %1450 = vmatprep.mubr.msk.f32.mxu1 %vm1499_vm0, %v1498_v0 }
 0x34d   : > { %v1069_v7 = vmul.f32 %v1489_v6, %v1481_v54 }
 0x34f   : > { %1451 = vmatmul.mubr.msk.f32.vlgmr.msra.gmra.mxu1 %vm538_vm3, %v1069_v7 }
 0x39f   : > { %v620_v8 = vpop.f32.mrf.mxu1 }
 0x3a0   : > { %624 = vst.msk [vmem:[#allocation2] sm:$0xff] %vm460_vm2, %v620_v8 }
 0x3a1   : > { %v1422_v9 = vpop.f32.mrf.mxu1 }
 0x407   : > { %v793_v10 = vpop.f32.mrf.mxu1 }
 0x408   : > { %798 = vrot.lane.b32.xlu1 %v793_v10, %s1502_s14 }
 0x409   : > { %v1432_v11 = vpop.f32.mrf.mxu1 }
 0x40b   : > { %v970_v12 = vpop.f32.mrf.mxu1 }
 0x40c   : > { %975 = vrot.lane.b32.xlu0 %v970_v12, %s1500_s12 }
 0x40d   : > { %v1442_v14 = vpop.f32.mrf.mxu1 }
 0x40f   : > { %v1147_v0 = vpop.f32.mrf.mxu1 }
 0x410   : > { %716 = vrot.lane.b32.xlu0 %v714_v1, %s1503_s23  ;;  %1152 = vrot.lane.b32.xlu1 %v1147_v0, %s1501_s13 }
 0x411   : > { %v1452_v15 = vpop.f32.mrf.mxu1 }
 0x414   : > { %1071 = vrot.lane.b32.xlu0 %v1069_v7, %s1504_s25  ;;  %894 = vrot.lane.b32.xlu1 %v892_v4, %s1505_s26 }
 0x47a   : > { %v799_v16 = vpop.permute.xlu1 %798 }
 0x47b   : > { %802 = vst.msk [vmem:[#allocation2] sm:$0xff] %vm801_vm4, %v799_v16 }
 0x47e   : > { %v976_v17 = vpop.permute.xlu0 %975 }
 0x47f   : > { %979 = vst.msk [vmem:[#allocation2] sm:$0xff] %vm978_vm5, %v976_v17 }
 0x482   : > { %v717_v18 = vpop.permute.xlu0 %716  ;;  %v1153_v19 = vpop.permute.xlu1 %1152 }
 0x483   : > { %720 = vst.msk [vmem:[%s1624_s18] sm:$0xff] %vm719_vm6, %v717_v18 }
 0x484   : > { %1156 = vst.msk [vmem:[#allocation2] sm:$0xff] %vm1155_vm7, %v1153_v19 }
 0x486   : > { %v1072_v20 = vpop.permute.xlu0 %1071  ;;  %v895_v21 = vpop.permute.xlu1 %894 }
 0x487   : > { %898 = vst.msk [vmem:[%s1624_s18] sm:$0xff] %vm897_vm8, %v895_v21 }
 0x488   : > { %1075 = vst.msk [vmem:[%s1624_s18] sm:$0xff] %vm1074_vm9, %v1072_v20 }
 0x48b   : > { %v1159_v22 = vld [vmem:[#allocation2] sm:$0xff] }
 0x48c   : > { %1453 = vmatprep.subr.mxu0 %v1159_v22 }
 0x48d   : > { %1454 = vmatpush3.msra.mxu0 %v1159_v22 }
 0x48e   : > { %1456 = vmatmul.mubr.msk.f32.vlgmr.msra.gmra.mxu0 %vm538_vm3, %v1158_v23 }
 0x54e   : > { %v1457_v24 = vpop.f32.mrf.mxu0 }
 0x54f   : > { %1242 = vst [vmem:[%s292_s7 + $0x8] sm:$0xff] %v1457_v24 }
 0x550   : > { %v1232_v25 = vpop.f32.mrf.mxu0 }
 0x551   : > { %1241 = vst [vmem:[%s292_s7] sm:$0xff] %v1232_v25 }
 0x552 PF: > { %s17_s21 = sadd.s32 1, %s1496_s21  }
 0x553   : > { %p14_p4 = scmp.ge.s32.totalorder %s17_s21, 4  }
 0x555   :  { %16 = sbr.rel (!%p14_p4) target bundleno = 1 (0x1), region = 88 }

</bundles_post_ra>
